<compile_context>
chip_gen: v7x
topology: tpu7x:2x2x1
jax: 0.10.0
libtpu: 0.0.40
codegen_flags: <defaults>
</compile_context>

<pallas_src>
import jax
import jax.numpy as jnp
from jax.experimental import pallas as pl
from jax.experimental.pallas import tpu as pltpu


def _nlinear_kernel_bias(x_ref, w_ref, b_ref, o_ref):
    # x_ref: (B, ft, d_in)   w_ref: (ft, d_in, d_out)
    # b_ref: (ft, 1, d_out)  o_ref: (B, ft, d_out)
    x_fm = pltpu.einshape("bfi->fbi", x_ref[...])            # (ft, B, d_in) VMEM relayout
    acc = jnp.einsum(
        "fbi,fio->fbo", x_fm, w_ref[...],
        preferred_element_type=jnp.float32)                   # (ft, B, d_out), f32 on MXU
    acc = acc + b_ref[...]                                    # broadcast over B
    o_ref[...] = pltpu.einshape("fbo->bfo", acc.astype(o_ref.dtype))


def _nlinear_kernel_nobias(x_ref, w_ref, o_ref):
    x_fm = pltpu.einshape("bfi->fbi", x_ref[...])
    acc = jnp.einsum(
        "fbi,fio->fbo", x_fm, w_ref[...],
        preferred_element_type=jnp.float32)
    o_ref[...] = pltpu.einshape("fbo->bfo", acc.astype(o_ref.dtype))


def _choose_features_per_block(n_features, per_feature_bytes, budget_bytes,
                               max_features):
    """Largest layout-legal exact divisor of n_features whose working set fits
    `budget_bytes`.

    Layout-legal = multiple of 8 (so the (B, ft, d) block's second-minor dim
    satisfies the (8,128) block rule) or the full feature extent.  Falls back
    to the smallest legal value when nothing fits the budget (still correct,
    just tighter VMEM).
    """
    legal = [d for d in range(8, n_features + 1, 8) if n_features % d == 0]
    if n_features not in legal:
        legal.append(n_features)          # full-extent block is always legal
    capped = [d for d in legal if d <= max_features] or [min(legal)]
    fitting = [d for d in capped if d * per_feature_bytes <= budget_bytes]
    return max(fitting) if fitting else min(capped)


def nlinear(x, weight, bias=None, *,
            features_per_block=None,
            block_budget_bytes=24 * 1024 * 1024,
            vmem_limit_bytes=48 * 1024 * 1024):
    """NLinear forward: out[b, f] = x[b, f] @ weight[f] + bias[f].

    x: (B, F, d_in); weight: (F, d_in, d_out); bias: (F, d_out) or None.
    Returns (B, F, d_out) in x.dtype.
    """
    B, F, d_in = x.shape
    wF, wd_in, d_out = weight.shape
    assert (wF, wd_in) == (F, d_in), "weight shape mismatch"

    itemsize = jnp.dtype(x.dtype).itemsize
    # Per-feature VMEM footprint: double-buffered pipeline blocks plus the
    # in-kernel temporaries (relayouted x, f32 accumulator, relayouted output).
    pipeline_per_f = 2 * (B * d_in + d_in * d_out + d_out + B * d_out) * itemsize
    temps_per_f = B * d_in * itemsize + B * d_out * 4 + B * d_out * itemsize
    per_feature_bytes = pipeline_per_f + temps_per_f

    max_ft = features_per_block if features_per_block is not None else 128
    ft = _choose_features_per_block(F, per_feature_bytes, block_budget_bytes,
                                    max_ft)
    grid = (F // ft,)

    x_spec = pl.BlockSpec((B, ft, d_in), lambda f: (0, f, 0))
    w_spec = pl.BlockSpec((ft, d_in, d_out), lambda f: (f, 0, 0))
    o_spec = pl.BlockSpec((B, ft, d_out), lambda f: (0, f, 0))

    flops = 2 * B * F * d_in * d_out
    bytes_accessed = itemsize * (B * F * d_in + F * d_in * d_out + B * F * d_out)

    if bias is not None:
        bias_fm = bias[:, None, :]                       # (F, 1, d_out), free reshape
        kernel = _nlinear_kernel_bias
        in_specs = [x_spec, w_spec,
                    pl.BlockSpec((ft, 1, d_out), lambda f: (f, 0, 0))]
        operands = (x, weight, bias_fm)
        flops += B * F * d_out
        bytes_accessed += itemsize * F * d_out
    else:
        kernel = _nlinear_kernel_nobias
        in_specs = [x_spec, w_spec]
        operands = (x, weight)

    return pl.pallas_call(
        kernel,
        out_shape=jax.ShapeDtypeStruct((B, F, d_out), x.dtype),
        grid_spec=pltpu.PrefetchScalarGridSpec(
            num_scalar_prefetch=0,
            grid=grid,
            in_specs=in_specs,
            out_specs=o_spec,
        ),
        compiler_params=pltpu.CompilerParams(
            dimension_semantics=("parallel",),
            vmem_limit_bytes=vmem_limit_bytes,
        ),
        cost_estimate=pl.CostEstimate(
            flops=flops, transcendentals=0, bytes_accessed=bytes_accessed),
    )(*operands)


def _init_params(key, n_features, d_in, d_out, dtype=jnp.float32):
    # Mirrors nn.Linear's default init (uniform in +-1/sqrt(d_in)),
    # applied independently per feature, weight stored transposed (d_in, d_out).
    kw, kb = jax.random.split(key)
    bound = 1.0 / (d_in ** 0.5)
    weight = jax.random.uniform(kw, (n_features, d_in, d_out), dtype,
                                minval=-bound, maxval=bound)
    bias = jax.random.uniform(kb, (n_features, d_out), dtype,
                              minval=-bound, maxval=bound)
    return weight, bias


def _reference(x, weight, bias=None):
    # Literal pure-JAX transcription of the PyTorch forward.
    out = jnp.sum(x[..., None] * weight[None], axis=-2)
    if bias is not None:
        out = out + bias[None]
    return out


if __name__ == "__main__":
    key = jax.random.PRNGKey(0)
    k1, k2, k3, k4 = jax.random.split(key, 4)

    # Test 1: single grid step (ft == F), with bias.
    B, F, d_in, d_out = 8, 8, 32, 16
    x = jax.random.normal(k1, (B, F, d_in), jnp.float32)
    weight, bias = _init_params(k2, F, d_in, d_out)
    out = jax.block_until_ready(nlinear(x, weight, bias))
    assert out.shape == (B, F, d_out)
    assert jnp.allclose(out, _reference(x, weight, bias), atol=1e-4, rtol=1e-4)

    # Test 1b: no-bias kernel variant.
    out_nb = jax.block_until_ready(nlinear(x, weight, None))
    assert jnp.allclose(out_nb, _reference(x, weight, None), atol=1e-4, rtol=1e-4)

    # Test 2: multi-step feature grid (forced feature blocking), uneven dims.
    B, F, d_in, d_out = 16, 24, 16, 40
    x = jax.random.normal(k3, (B, F, d_in), jnp.float32)
    weight, bias = _init_params(k4, F, d_in, d_out)
    out = jax.block_until_ready(nlinear(x, weight, bias, features_per_block=8))
    assert out.shape == (B, F, d_out)
    assert jnp.allclose(out, _reference(x, weight, bias), atol=1e-4, rtol=1e-4)

    print("KERNEL_OK")
</pallas_src>

<mosaic_0001>
module attributes {stable_mosaic.version = 11 : i64} {
  func.func @_nlinear_kernel_bias(%arg0: i32, %arg1: memref<8x8x32xf32, #tpu.memory_space<vmem>>, %arg2: memref<8x32x16xf32, #tpu.memory_space<vmem>>, %arg3: memref<8x1x16xf32, #tpu.memory_space<vmem>>, %arg4: memref<8x8x16xf32, #tpu.memory_space<vmem>>) attributes {dimension_semantics = [#tpu.dimension_semantics<parallel>], iteration_bounds = array<i64: 1>, scalar_prefetch = 0 : i64, scratch_operands = 0 : i64, tpu.core_type = #tpu.core_type<tc>, window_params = [{transform_indices = @transform_0, window_bounds = array<i64: 8, 8, 32>}, {transform_indices = @transform_1, window_bounds = array<i64: 8, 32, 16>}, {transform_indices = @transform_2, window_bounds = array<i64: 8, 1, 16>}, {transform_indices = @transform_3, window_bounds = array<i64: 8, 8, 16>}]} {
    %c0 = arith.constant 0 : index
    %c0_0 = arith.constant 0 : index
    %c0_1 = arith.constant 0 : index
    %0 = vector.load %arg1[%c0, %c0_0, %c0_1] : memref<8x8x32xf32, #tpu.memory_space<vmem>>, vector<8x8x32xf32>
    %1 = tpu.transpose %0, [1, 0, 2] : vector<8x8x32xf32> -> vector<8x8x32xf32>
    %c0_2 = arith.constant 0 : index
    %c0_3 = arith.constant 0 : index
    %c0_4 = arith.constant 0 : index
    %2 = vector.load %arg2[%c0_2, %c0_3, %c0_4] : memref<8x32x16xf32, #tpu.memory_space<vmem>>, vector<8x32x16xf32>
    "tpu.trace_start"() <{level = 10 : i32, message = "fbi,fio->fbo"}> : () -> ()
    %cst = arith.constant dense<0.000000e+00> : vector<8x8x16xf32>
    %3 = tpu.matmul %1, %2, %cst {dimension_numbers = #tpu.dot_dimension_numbers<[2], [1], [1], [2], [0, 0, 0, 1, 1, 2], [0], [0]>} : vector<8x8x32xf32>, vector<8x32x16xf32>, vector<8x8x16xf32> -> vector<8x8x16xf32>
    "tpu.trace_stop"() : () -> ()
    %c0_5 = arith.constant 0 : index
    %c0_6 = arith.constant 0 : index
    %c0_7 = arith.constant 0 : index
    %4 = vector.load %arg3[%c0_5, %c0_6, %c0_7] : memref<8x1x16xf32, #tpu.memory_space<vmem>>, vector<8x1x16xf32>
    %5 = vector.broadcast %4 : vector<8x1x16xf32> to vector<8x8x16xf32>
    %6 = arith.addf %3, %5 : vector<8x8x16xf32>
    %7 = tpu.transpose %6, [1, 0, 2] : vector<8x8x16xf32> -> vector<8x8x16xf32>
    %c0_8 = arith.constant 0 : index
    %c0_9 = arith.constant 0 : index
    %c0_10 = arith.constant 0 : index
    %8 = vector.load %arg4[%c0_8, %c0_9, %c0_10] : memref<8x8x16xf32, #tpu.memory_space<vmem>>, vector<8x8x16xf32>
    tpu.vector_store %arg4[%c0_8, %c0_9, %c0_10], %7 {strides = array<i32>} : memref<8x8x16xf32, #tpu.memory_space<vmem>>, vector<8x8x16xf32>,
    return
  }
  func.func @transform_0(%arg0: i32) -> (i32, i32, i32) {
    %c0_i32 = arith.constant 0 : i32
    %c0_i32_0 = arith.constant 0 : i32
    %c0_i32_1 = arith.constant 0 : i32
    return %c0_i32, %arg0, %c0_i32_0 : i32, i32, i32
  }
  func.func @transform_1(%arg0: i32) -> (i32, i32, i32) {
    %c0_i32 = arith.constant 0 : i32
    %c0_i32_0 = arith.constant 0 : i32
    %c0_i32_1 = arith.constant 0 : i32
    return %arg0, %c0_i32, %c0_i32_0 : i32, i32, i32
  }
  func.func @transform_2(%arg0: i32) -> (i32, i32, i32) {
    %c0_i32 = arith.constant 0 : i32
    %c0_i32_0 = arith.constant 0 : i32
    %c0_i32_1 = arith.constant 0 : i32
    return %arg0, %c0_i32, %c0_i32_0 : i32, i32, i32
  }
  func.func @transform_3(%arg0: i32) -> (i32, i32, i32) {
    %c0_i32 = arith.constant 0 : i32
    %c0_i32_0 = arith.constant 0 : i32
    %c0_i32_1 = arith.constant 0 : i32
    return %c0_i32, %arg0, %c0_i32_0 : i32, i32, i32
  }
}

</mosaic_0001>

<bundles_post_ra>
// kernel: tpu_custom_call.1
= control target key start
LH: loop header
LB: loop body
LE: loop exit
PB: predicated region body
PF: predicated region fallthrough
CT: control target
= control target key end

     0   :  { %v28_v3 = vlaneseq  ;;  %v1229_v4 = vmov 0.0|0.0   ;;  %vm1230_vm0 = vmmov 0   ;;  %v1231_v12 = vmov 0.0   ;;  %s1512_s0 = inlined_call_operand.vmem [shape: f32[8,8,32], index: 0, kind: input, shape index: {}]   ;;  %s1513_s1 = inlined_call_operand.vmem [shape: f32[8,32,16], index: 1, kind: input, shape index: {}]   ;;  %s1514_s2 = inlined_call_operand.vmem [shape: f32[8,1,16], index: 2, kind: input, shape index: {}]   ;;  %s1515_s3 = inlined_call_operand.hbm [shape: f32[8,8,16], index: 3, kind: output, shape index: {}]  }
   0x1   :  { %v159_v0 = vld [vmem:[%s1513_s1] sm:$0xff]  ;;  %v160_v1 = vld [vmem:[%s1513_s1 + $0x8] sm:$0xff]  ;;  %1137 = vmatprep.subr.bf16.mxu0 %v1229_v4  ;;  %1143 = vmatprep.subr.bf16.mxu1 %v1229_v4  ;;  %v161_v7 = vld [vmem:[%s1513_s1 + $0x10] sm:$0xff]  ;;  %v1232_v13 = vmov 1983009808   ;;  %vm247_vm1 = vcmask 261120  }
   0x2   :  { %v163_v2 = vld [vmem:[%s1513_s1 + $0x20] sm:$0xff]  ;;  %v1138_v5 = vpack.c.bf16 %v160_v1, %v159_v0  ;;  %v164_v6 = vld [vmem:[%s1513_s1 + $0x28] sm:$0xff]  ;;  %v162_v8 = vld [vmem:[%s1513_s1 + $0x18] sm:$0xff]  ;;  %1057 = vmatprep.mubr.msk.f32.mxu0 %vm1230_vm0, %v1231_v12  ;;  %1068 = vmatprep.mubr.msk.f32.mxu1 %vm1230_vm0, %v1231_v12  ;;  %v26_v14 = vunpack.c.l.s4 %v1232_v13  ;;  %v29_v15 = vshrl.u32 %v28_v3, 7  ;;  %v1233_v19 = vmov 1934713408  }
   0x3   :  { %v1144_v9 = vpack.c.bf16 %v164_v6, %v163_v2  ;;  %v165_v10 = vld [vmem:[%s1513_s1 + $0x30] sm:$0xff]  ;;  %v166_v11 = vld [vmem:[%s1513_s1 + $0x38] sm:$0xff]  ;;  %v1141_v16 = vpack.c.bf16 %v162_v8, %v161_v7  ;;  %v90_v20 = vunpack.c.l.s4 %v1233_v19  ;;  %v167_v33 = vld [vmem:[%s1513_s1 + $0x40] sm:$0xff] }
   0x4   :  { %1139 = vmatpush3.bf16.msra.mxu0 %v1138_v5  ;;  %v1147_v17 = vpack.c.bf16 %v166_v11, %v165_v10  ;;  %v27_v18 = vunpack.c.0.s8 %v26_v14  ;;  %v1193_v21 = vld [vmem:[%s1512_s0] ss:$16 sps:$4 sm:$0xff]   ;;  %v1196_v23 = vld [vmem:[%s1512_s0 + $0x8] ss:$16 sps:$4 sm:$0xff]   ;;  %v1195_v38 = vld [vmem:[%s1512_s0 + $0x4] ss:$16 sps:$4 sm:$0xff]  }
   0x5   :  { %1145 = vmatpush3.bf16.msra.mxu1 %v1144_v9  ;;  %1140 = vmatprep.subr.bf16.mxu0 %v1229_v4  ;;  %v1199_v24 = vld [vmem:[%s1512_s0 + $0x20] ss:$16 sps:$4 sm:$0xff]   ;;  %v91_v25 = vunpack.c.0.s8 %v90_v20  ;;  %v1202_v26 = vld [vmem:[%s1512_s0 + $0x28] ss:$16 sps:$4 sm:$0xff]   ;;  %v1198_v39 = vld [vmem:[%s1512_s0 + $0xc] ss:$16 sps:$4 sm:$0xff]  }
   0x6   :  { %1146 = vmatprep.subr.bf16.mxu1 %v1229_v4  ;;  %v1292_v22 = vsub.s32 %v27_v18, %v29_v15  ;;  %v168_v35 = vld [vmem:[%s1513_s1 + $0x48] sm:$0xff]  ;;  %v171_v36 = vld [vmem:[%s1513_s1 + $0x60] sm:$0xff]  ;;  %v169_v48 = vld [vmem:[%s1513_s1 + $0x50] sm:$0xff] }
   0x7   :  { %v1309_v31 = vsub.s32 %v91_v25, %v29_v15  ;;  %v172_v37 = vld [vmem:[%s1513_s1 + $0x68] sm:$0xff]  ;;  %v1201_v42 = vld [vmem:[%s1512_s0 + $0x24] ss:$16 sps:$4 sm:$0xff]   ;;  %v1150_v46 = vpack.c.bf16 %v168_v35, %v167_v33  ;;  %v170_v51 = vld [vmem:[%s1513_s1 + $0x58] sm:$0xff] }
   0x8   :  { %1142 = vmatpush3.bf16.msra.mxu0 %v1141_v16  ;;  %v31_v27 = vrot.slane %v1193_v21, %v1292_v22  ;;  %v47_v28 = vrot.slane %v1196_v23, %v1292_v22  ;;  %v63_v29 = vrot.slane %v1199_v24, %v1292_v22  ;;  %v79_v30 = vrot.slane %v1202_v26, %v1292_v22  ;;  %v1204_v43 = vld [vmem:[%s1512_s0 + $0x2c] ss:$16 sps:$4 sm:$0xff]   ;;  %v173_v52 = vld [vmem:[%s1513_s1 + $0x70] sm:$0xff] }
   0x9   :  { %1148 = vmatpush3.bf16.msra.mxu1 %v1147_v17  ;;  %1149 = vmatprep.subr.bf16.mxu0 %v1229_v4  ;;  %v1156_v47 = vpack.c.bf16 %v172_v37, %v171_v36  ;;  %v174_v53 = vld [vmem:[%s1513_s1 + $0x78] sm:$0xff]  ;;  %v1351_v55 = vrot.slane %v1195_v38, %v1292_v22  ;;  %v1354_v56 = vrot.slane %v1198_v39, %v1292_v22 }
   0xa   :  { %1155 = vmatprep.subr.bf16.mxu1 %v1229_v4  ;;  %v87_v32 = vcombine.low %v31_v27, %v47_v28  ;;  %v119_v34 = vcombine.low %v63_v29, %v79_v30  ;;  %v88_v40 = vcombine.high %v31_v27, %v47_v28  ;;  %v120_v44 = vcombine.high %v63_v29, %v79_v30 }
   0xc   :  { %v95_v41 = vrot.slane %v87_v32, %v1309_v31  ;;  %v127_v45 = vrot.slane %v119_v34, %v1309_v31  ;;  %v102_v54 = vrot.slane %v88_v40, %v1309_v31 }
   0xe   :  { %v151_v49 = vcombine.low %v95_v41, %v127_v45  ;;  %v152_v50 = vcombine.high %v95_v41, %v127_v45 }
   0xf   :  { %8 = vsyncpa [#allocation3], 0  ;;  %v134_v57 = vrot.slane %v120_v44, %v1309_v31  ;;  %v70_v58 = vrot.slane %v1201_v42, %v1292_v22  ;;  %v86_v59 = vrot.slane %v1204_v43, %v1292_v22  ;;  %v1153_v60 = vpack.c.bf16 %v170_v51, %v169_v48  ;;  %v175_v62 = vld [vmem:[%s1513_s1 + $0x80] sm:$0xff]  ;;  %v176_v63 = vld [vmem:[%s1513_s1 + $0x88] sm:$0xff] }
  0x10   :  { %1058 = vmatmul.mubr.msk.f32.vlgmr.msra.gmra.mrb[0].mxu0 %vm247_vm1, %v151_v49  ;;  %1069 = vmatmul.mubr.msk.f32.vlgmr.msra.gmra.mrb[0].mxu1 %vm247_vm1, %v152_v50  ;;  %v1159_v61 = vpack.c.bf16 %v174_v53, %v173_v52  ;;  %v179_v0 = vld [vmem:[%s1513_s1 + $0xa0] sm:$0xff]  ;;  %v180_v1 = vld [vmem:[%s1513_s1 + $0xa8] sm:$0xff]  ;;  %v103_v5 = vcombine.low %v1351_v55, %v1354_v56  ;;  %v1162_v7 = vpack.c.bf16 %v176_v63, %v175_v62  ;;  %v177_v9 = vld [vmem:[%s1513_s1 + $0x90] sm:$0xff]  ;;  %vm968_vm2 = vcmask 130048  }
  0x11   :  { %1151 = vmatpush3.bf16.msra.mxu0 %v1150_v46  ;;  %1157 = vmatpush3.bf16.msra.mxu1 %v1156_v47  ;;  %v153_v2 = vcombine.low %v102_v54, %v134_v57  ;;  %v154_v3 = vcombine.high %v102_v54, %v134_v57  ;;  %v135_v6 = vcombine.low %v70_v58, %v86_v59  ;;  %v178_v10 = vld [vmem:[%s1513_s1 + $0x98] sm:$0xff]  ;;  %v181_v11 = vld [vmem:[%s1513_s1 + $0xb0] sm:$0xff]  ;;  %v183_v18 = vld [vmem:[%s1513_s1 + $0xc0] sm:$0xff] }
  0x12   :  { %1152 = vmatprep.subr.bf16.mxu0 %v1229_v4  ;;  %1158 = vmatprep.subr.bf16.mxu1 %v1229_v4  ;;  %v1168_v8 = vpack.c.bf16 %v180_v1, %v179_v0  ;;  %v182_v13 = vld [vmem:[%s1513_s1 + $0xb8] sm:$0xff]  ;;  %v111_v14 = vrot.slane %v103_v5, %v1309_v31  ;;  %v1165_v16 = vpack.c.bf16 %v178_v10, %v177_v9  ;;  %v184_v19 = vld [vmem:[%s1513_s1 + $0xc8] sm:$0xff]  ;;  %v187_v20 = vld [vmem:[%s1513_s1 + $0xe0] sm:$0xff] }
  0x13   :  { %1079 = vmatprep.mubr.msk.f32.mxu0 %vm1230_vm0, %v1231_v12  ;;  %1090 = vmatprep.mubr.msk.f32.mxu1 %vm1230_vm0, %v1231_v12  ;;  %v143_v15 = vrot.slane %v135_v6, %v1309_v31  ;;  %v1171_v17 = vpack.c.bf16 %v182_v13, %v181_v11  ;;  %v188_v21 = vld [vmem:[%s1513_s1 + $0xe8] sm:$0xff]  ;;  %v104_v25 = vcombine.high %v1351_v55, %v1354_v56  ;;  %v185_v29 = vld [vmem:[%s1513_s1 + $0xd0] sm:$0xff]  ;;  %v186_v30 = vld [vmem:[%s1513_s1 + $0xd8] sm:$0xff] }
  0x14   :  { %v136_v26 = vcombine.high %v70_v58, %v86_v59  ;;  %v1174_v27 = vpack.c.bf16 %v184_v19, %v183_v18  ;;  %v1180_v28 = vpack.c.bf16 %v188_v21, %v187_v20  ;;  %v189_v32 = vld [vmem:[%s1513_s1 + $0xf0] sm:$0xff]  ;;  %v190_v33 = vld [vmem:[%s1513_s1 + $0xf8] sm:$0xff]  ;;  %v1177_v36 = vpack.c.bf16 %v186_v30, %v185_v29  ;;  %v995_v44 = vld [vmem:[%s1514_s2 + $0x2] ss:$0 sm:$0xff] }
  0x15   :  { %1154 = vmatpush3.bf16.msra.mxu0 %v1153_v60  ;;  %1160 = vmatpush3.bf16.msra.mxu1 %v1159_v61  ;;  %v155_v23 = vcombine.low %v111_v14, %v143_v15  ;;  %v156_v24 = vcombine.high %v111_v14, %v143_v15  ;;  %v118_v34 = vrot.slane %v104_v25, %v1309_v31  ;;  %v996_v45 = vld [vmem:[%s1514_s2 + $0x3] ss:$0 sm:$0xff]  ;;  %v999_v9 = vld [vmem:[%s1514_s2 + $0x6] ss:$0 sm:$0xff]  ;;  %v1000_v10 = vld [vmem:[%s1514_s2 + $0x7] ss:$0 sm:$0xff] }
  0x16   :  { %1161 = vmatprep.subr.bf16.mxu0 %v1229_v4  ;;  %1167 = vmatprep.subr.bf16.mxu1 %v1229_v4  ;;  %v150_v35 = vrot.slane %v136_v26, %v1309_v31  ;;  %v1183_v37 = vpack.c.bf16 %v190_v33, %v189_v32 }
  0x18   :  { %1080 = vmatmul.mubr.msk.f32.vlgmr.msra.gmra.mrb[2].mxu0 %vm247_vm1, %v153_v2  ;;  %1091 = vmatmul.mubr.msk.f32.vlgmr.msra.gmra.mrb[2].mxu1 %vm247_vm1, %v154_v3  ;;  %v157_v38 = vcombine.low %v118_v34, %v150_v35  ;;  %v158_v39 = vcombine.high %v118_v34, %v150_v35 }
  0x19   :  { %1163 = vmatpush3.bf16.msra.mxu0 %v1162_v7  ;;  %1169 = vmatpush3.bf16.msra.mxu1 %v1168_v8  ;;  %v997_v7 = vld [vmem:[%s1514_s2 + $0x4] ss:$0 sm:$0xff]  ;;  %v998_v8 = vld [vmem:[%s1514_s2 + $0x5] ss:$0 sm:$0xff] }
  0x1a   :  { %1164 = vmatprep.subr.bf16.mxu0 %v1229_v4  ;;  %1170 = vmatprep.subr.bf16.mxu1 %v1229_v4 }
  0x1b   :  { %1101 = vmatprep.mubr.msk.f32.mxu0 %vm1230_vm0, %v1231_v12  ;;  %1112 = vmatprep.mubr.msk.f32.mxu1 %vm1230_vm0, %v1231_v12 }
  0x1d   :  { %1166 = vmatpush3.bf16.msra.mxu0 %v1165_v16  ;;  %1172 = vmatpush3.bf16.msra.mxu1 %v1171_v17 }
  0x1e   :  { %1173 = vmatprep.subr.bf16.mxu0 %v1229_v4  ;;  %1179 = vmatprep.subr.bf16.mxu1 %v1229_v4 }
  0x20   :  { %1102 = vmatmul.mubr.msk.f32.vlgmr.msra.gmra.mrb[4].mxu0 %vm247_vm1, %v155_v23  ;;  %1113 = vmatmul.mubr.msk.f32.vlgmr.msra.gmra.mrb[4].mxu1 %vm247_vm1, %v156_v24 }
  0x21   :  { %1175 = vmatpush3.bf16.msra.mxu0 %v1174_v27  ;;  %1181 = vmatpush3.bf16.msra.mxu1 %v1180_v28 }
  0x22   :  { %1176 = vmatprep.subr.bf16.mxu0 %v1229_v4  ;;  %1182 = vmatprep.subr.bf16.mxu1 %v1229_v4  ;;  %v993_v4 = vld [vmem:[%s1514_s2] ss:$0 sm:$0xff] }
  0x23   :  { %1123 = vmatprep.mubr.msk.f32.mxu0 %vm1230_vm0, %v1231_v12  ;;  %1134 = vmatprep.mubr.msk.f32.mxu1 %vm1230_vm0, %v1231_v12  ;;  %v994_v12 = vld [vmem:[%s1514_s2 + $0x1] ss:$0 sm:$0xff]  ;;  %s1234_s2 = smov [#allocation2]  }
  0x24   :  { %s982_s24 = sshll.u32 %s1234_s2, 4  ;;  %s1485_s24 = int_to_ptr.vmem [resolvable:$true] %s982_s24 }
  0x25   :  { %1178 = vmatpush3.bf16.msra.mxu0 %v1177_v36  ;;  %1184 = vmatpush3.bf16.msra.mxu1 %v1183_v37  ;;  %s1205_s25 = scalar_lea.vmem %s1485_s24, 1024  ;;  %p1210_p1 = scmp.lt.s32.totalorder %s1485_s24, %s1485_s24 }
  0x26   :  { %p1206_p0 = scmp.ne.s32.totalorder %s1485_s24, %s1205_s25  ;;  %p1211_p2 = scmp.lt.s32.totalorder %s1205_s25, %s1205_s25 }
  0x28   :  { %1124 = vmatmul.mubr.msk.f32.vlgmr.msra.gmra.mrb[6].mxu0 %vm247_vm1, %v157_v38  ;;  %1135 = vmatmul.mubr.msk.f32.vlgmr.msra.gmra.mrb[6].mxu1 %vm247_vm1, %v158_v39  ;;  %p1212_p3 = por %p1211_p2, %p1210_p1 }
  0x2a   :  { %p1213_p4 = pnand %p1212_p3, %p1206_p0 }
  0xe3   :  { %v317_v40 = vpop.f32.mrb[0].mxu0  ;;  %v390_v41 = vpop.f32.mrb[0].mxu1 }
  0xe4   :  { %v1059_v42 = vpop.f32.mrb[1].mxu0  ;;  %v1070_v43 = vpop.f32.mrb[1].mxu1  ;;  %v318_v48 = vadd.f32 %v993_v4, %v317_v40  ;;  %v391_v49 = vadd.f32 %v994_v12, %v390_v41 }
  0xeb   :  { %v463_v46 = vpop.f32.mrb[2].mxu0  ;;  %v536_v47 = vpop.f32.mrb[2].mxu1 }
  0xec   :  { %v464_v50 = vadd.f32 %v995_v44, %v463_v46  ;;  %v537_v51 = vadd.f32 %v996_v45, %v536_v47  ;;  %v1081_v52 = vpop.f32.mrb[3].mxu0  ;;  %v1092_v53 = vpop.f32.mrb[3].mxu1 }
  0xee   :  { %v832_v54 = vcombine.low %v318_v48, %v464_v50  ;;  %v833_v55 = vcombine.high %v318_v48, %v464_v50  ;;  %v848_v56 = vcombine.low %v391_v49, %v537_v51  ;;  %v849_v57 = vcombine.high %v391_v49, %v537_v51 }
  0xf0   :  { %v840_v58 = vrot.slane %v832_v54, %v1292_v22  ;;  %v847_v59 = vrot.slane %v833_v55, %v1292_v22  ;;  %v856_v60 = vrot.slane %v848_v56, %v1292_v22  ;;  %v863_v61 = vrot.slane %v849_v57, %v1292_v22 }
  0xf2   :  { %v896_v62 = vcombine.low %v840_v58, %v856_v60  ;;  %v897_v63 = vcombine.high %v840_v58, %v856_v60  ;;  %v912_v0 = vcombine.low %v847_v59, %v863_v61  ;;  %v913_v1 = vcombine.high %v847_v59, %v863_v61 }
  0xf3   :  { %v609_v2 = vpop.f32.mrb[4].mxu0  ;;  %v682_v3 = vpop.f32.mrb[4].mxu1 }
  0xf4   :  { %v1103_v5 = vpop.f32.mrb[5].mxu0  ;;  %v1114_v6 = vpop.f32.mrb[5].mxu1  ;;  %v610_v14 = vadd.f32 %v997_v7, %v609_v2  ;;  %v683_v15 = vadd.f32 %v998_v8, %v682_v3  ;;  %v904_v34 = vrot.slane %v896_v62, %v1309_v31  ;;  %v911_v35 = vrot.slane %v897_v63, %v1309_v31 }
  0xf5   :  { %v927_v40 = vrot.slane %v913_v1, %v1309_v31 }
  0xfb   :  { %v755_v11 = vpop.f32.mrb[6].mxu0  ;;  %v828_v13 = vpop.f32.mrb[6].mxu1 }
  0xfc   :  { %v756_v16 = vadd.f32 %v999_v9, %v755_v11  ;;  %v829_v17 = vadd.f32 %v1000_v10, %v828_v13  ;;  %v1125_v18 = vpop.f32.mrb[7].mxu0  ;;  %v1136_v19 = vpop.f32.mrb[7].mxu1 }
  0xfe   :  { %v864_v20 = vcombine.low %v610_v14, %v756_v16  ;;  %v865_v21 = vcombine.high %v610_v14, %v756_v16  ;;  %v880_v23 = vcombine.low %v683_v15, %v829_v17  ;;  %v881_v24 = vcombine.high %v683_v15, %v829_v17 }
 0x100   :  { %v872_v25 = vrot.slane %v864_v20, %v1292_v22  ;;  %v879_v26 = vrot.slane %v865_v21, %v1292_v22  ;;  %v888_v27 = vrot.slane %v880_v23, %v1292_v22  ;;  %v895_v28 = vrot.slane %v881_v24, %v1292_v22 }
 0x101   :  { %v920_v22 = vrot.slane %v912_v0, %v1309_v31 }
 0x102   :  { %v928_v29 = vcombine.low %v872_v25, %v888_v27  ;;  %v929_v30 = vcombine.high %v872_v25, %v888_v27  ;;  %v944_v32 = vcombine.low %v879_v26, %v895_v28  ;;  %v945_v33 = vcombine.high %v879_v26, %v895_v28 }
 0x104   :  { %v936_v36 = vrot.slane %v928_v29, %v1309_v31  ;;  %v943_v37 = vrot.slane %v929_v30, %v1309_v31  ;;  %v952_v38 = vrot.slane %v944_v32, %v1309_v31  ;;  %v959_v39 = vrot.slane %v945_v33, %v1309_v31 }
 0x106   :  { %v960_v41 = vcombine.low %v904_v34, %v936_v36  ;;  %v961_v42 = vcombine.high %v904_v34, %v936_v36  ;;  %v962_v43 = vcombine.low %v911_v35, %v943_v37  ;;  %v963_v4 = vcombine.high %v911_v35, %v943_v37 }
 0x107   :  { %v964_v12 = vcombine.low %v920_v22, %v952_v38  ;;  %v965_v44 = vcombine.high %v920_v22, %v952_v38  ;;  %v966_v45 = vcombine.low %v927_v40, %v959_v39  ;;  %v967_v46 = vcombine.high %v927_v40, %v959_v39 }
 0x108   :  { %969 = vst.msk [vmem:[#allocation2] sm:$0xff] %vm968_vm2, %v960_v41  ;;  %970 = vst.msk [vmem:[#allocation2 + $0x8] sm:$0xff] %vm968_vm2, %v961_v42 }
 0x109   :  { %971 = vst.msk [vmem:[#allocation2 + $0x10] sm:$0xff] %vm968_vm2, %v962_v43  ;;  %972 = vst.msk [vmem:[#allocation2 + $0x18] sm:$0xff] %vm968_vm2, %v963_v4 }
 0x10a   :  { %973 = vst.msk [vmem:[#allocation2 + $0x20] sm:$0xff] %vm968_vm2, %v964_v12  ;;  %974 = vst.msk [vmem:[#allocation2 + $0x28] sm:$0xff] %vm968_vm2, %v965_v44 }
 0x10b   :  { %975 = vst.msk [vmem:[#allocation2 + $0x30] sm:$0xff] %vm968_vm2, %v966_v45  ;;  %976 = vst.msk [vmem:[#allocation2 + $0x38] sm:$0xff] %vm968_vm2, %v967_v46 }
 0x10c   :  { %1216 = shalt.err (!%p1213_p4)
}
 0x10d   :  { %s1217_s28 = scalar_lea.hbm %s1515_s3, 1024 }
 0x10e   :  { %p1218_p5 = scmp.ne.s32.totalorder %s1515_s3, %s1217_s28  ;;  %p1221_p6 = scmp.lt.u32.totalorder %s1217_s28, %s1515_s3 }
 0x110   :  { %p1223_p7 = pnand %p1221_p6, %p1218_p5 }
 0x112   :  { %1226 = shalt.err (!%p1223_p7)
}
 0x113   :  { %s1235_s5 = smov 128   ;;  %s1236_s6 = smov 8  }
 0x114   :  { %988 = dma.vmem_to_hbm [thread:$0]  %s1485_s24, 1024, %s1515_s3, [#allocation3], %s1235_s5, %s1235_s5, %s1236_s6  }
 0x115   :  { %1227 = dma.done.wait [#allocation3], 1024  }
 0x116   :  { %1228 = vsyncadd [#allocation3], 4294966272 }
 0x117   :  { %992 = vsyncpa [#allocation3], 1 }

</bundles_post_ra>
